<compile_context>
chip_gen: v7x
topology: tpu7x:2x2x1
jax: 0.10.0
libtpu: 0.0.40
codegen_flags: <defaults>
</compile_context>

<pallas_src>
import jax
import jax.numpy as jnp
from jax.experimental import pallas as pl
from jax.experimental.pallas import tpu as pltpu

IN_DIM = 2000      # Linear in/out feature size from the PyTorch module
HID_DIM = 50       # bottleneck size
IN_PAD = 2048      # 2000 padded up to a multiple of 128 (lane-dense)
TILE_N = 512       # decoder output column tile -> 4 grid steps over 2048
BATCH = 8


def autoencoder_kernel(x_ref, w1_ref, b1_ref, w2_ref, b2_ref,
                       enc_ref, dec_ref, enc_acc):
    # Encoder runs once on the first grid step; result kept resident in VMEM.
    @pl.when(pl.program_id(0) == 0)
    def _():
        h = jnp.dot(x_ref[...], w1_ref[...],
                    preferred_element_type=jnp.float32)        # [B, 50] f32
        enc = jnp.maximum(h + b1_ref[...], 0.0)                # ReLU
        enc_acc[...] = enc
        enc_ref[...] = enc.astype(enc_ref.dtype)

    # Decoder: one TILE_N-wide column tile of Linear(50 -> 2048) + ReLU.
    d = jnp.dot(enc_acc[...], w2_ref[...].astype(jnp.float32),
                preferred_element_type=jnp.float32)            # [B, TILE_N]
    dec_ref[...] = jnp.maximum(d + b2_ref[...], 0.0).astype(dec_ref.dtype)


def autoencoder_forward(x, w1, b1, w2, b2):
    """x: [B, 2000]; w1: [2000, 50]; b1: [50]; w2: [50, 2000]; b2: [2000].

    Weights are the transposed ([in, out]) layout of nn.Linear's [out, in].
    Returns (encoded [B, 50] f32, decoded [B, 2000] f32).
    """
    B = x.shape[0]
    B_pad = max(8, ((B + 7) // 8) * 8)           # sublane alignment

    # Lane-dense bf16 operands (zero padding does not change the math).
    x_p = jnp.pad(x.astype(jnp.bfloat16),
                  ((0, B_pad - B), (0, IN_PAD - IN_DIM)))
    w1_p = jnp.pad(w1.astype(jnp.bfloat16), ((0, IN_PAD - IN_DIM), (0, 0)))
    b1_p = b1.reshape(1, HID_DIM).astype(jnp.float32)
    w2_p = jnp.pad(w2.astype(jnp.bfloat16), ((0, 0), (0, IN_PAD - IN_DIM)))
    b2_p = jnp.pad(b2.reshape(1, IN_DIM).astype(jnp.float32),
                   ((0, 0), (0, IN_PAD - IN_DIM)))

    n_tiles = IN_PAD // TILE_N
    bytes_accessed = (x_p.size * 2 + w1_p.size * 2 + w2_p.size * 2
                      + b1_p.size * 4 + b2_p.size * 4
                      + B_pad * HID_DIM * 4 + B_pad * IN_PAD * 4)

    enc_p, dec_p = pl.pallas_call(
        autoencoder_kernel,
        out_shape=(
            jax.ShapeDtypeStruct((B_pad, HID_DIM), jnp.float32),   # encoded
            jax.ShapeDtypeStruct((B_pad, IN_PAD), jnp.float32),    # decoded (padded)
        ),
        grid_spec=pltpu.PrefetchScalarGridSpec(
            num_scalar_prefetch=0,
            grid=(n_tiles,),
            in_specs=[
                pl.BlockSpec((B_pad, IN_PAD), lambda j: (0, 0)),    # x (pinned)
                pl.BlockSpec((IN_PAD, HID_DIM), lambda j: (0, 0)),  # W1 (pinned)
                pl.BlockSpec((1, HID_DIM), lambda j: (0, 0)),       # b1 (pinned)
                pl.BlockSpec((HID_DIM, TILE_N), lambda j: (0, j)),  # W2 column tile
                pl.BlockSpec((1, TILE_N), lambda j: (0, j)),        # b2 tile
            ],
            out_specs=(
                pl.BlockSpec((B_pad, HID_DIM), lambda j: (0, 0)),   # encoded (resident)
                pl.BlockSpec((B_pad, TILE_N), lambda j: (0, j)),    # decoded tile
            ),
            scratch_shapes=[pltpu.VMEM((B_pad, HID_DIM), jnp.float32)],
        ),
        compiler_params=pltpu.CompilerParams(
            # encoded output block index is constant over the grid axis
            # (accumulator-style residency) -> axis must be "arbitrary".
            dimension_semantics=("arbitrary",),
            vmem_limit_bytes=4 << 20,
        ),
        cost_estimate=pl.CostEstimate(
            flops=2 * B_pad * IN_PAD * HID_DIM * 2,   # encoder + decoder matmuls
            transcendentals=0,
            bytes_accessed=bytes_accessed,
        ),
    )(x_p, w1_p, b1_p, w2_p, b2_p)

    return enc_p[:B], dec_p[:B, :IN_DIM]


def reference_forward(x, w1, b1, w2, b2):
    enc = jnp.maximum(
        jnp.dot(x, w1, precision=jax.lax.Precision.HIGHEST) + b1.reshape(1, -1),
        0.0)
    dec = jnp.maximum(
        jnp.dot(enc, w2, precision=jax.lax.Precision.HIGHEST) + b2.reshape(1, -1),
        0.0)
    return enc, dec


if __name__ == "__main__":
    key = jax.random.PRNGKey(0)
    kx, kw1, kb1, kw2, kb2 = jax.random.split(key, 5)

    # Deterministic synthetic parameters; PyTorch nn.Linear stores weight as
    # [out, in] — here we keep the transposed [in, out] layout.
    x = jax.random.normal(kx, (BATCH, IN_DIM), dtype=jnp.float32)
    w1 = jax.random.normal(kw1, (IN_DIM, HID_DIM), dtype=jnp.float32) * 0.02
    b1 = jax.random.normal(kb1, (HID_DIM,), dtype=jnp.float32) * 0.02
    w2 = jax.random.normal(kw2, (HID_DIM, IN_DIM), dtype=jnp.float32) * 0.02
    b2 = jax.random.normal(kb2, (IN_DIM,), dtype=jnp.float32) * 0.02

    enc, dec = jax.block_until_ready(autoencoder_forward(x, w1, b1, w2, b2))
    assert enc.shape == (BATCH, HID_DIM) and dec.shape == (BATCH, IN_DIM)

    # Tight check: f32 math on the same bf16-rounded operands the kernel sees.
    xr = x.astype(jnp.bfloat16).astype(jnp.float32)
    w1r = w1.astype(jnp.bfloat16).astype(jnp.float32)
    w2r = w2.astype(jnp.bfloat16).astype(jnp.float32)
    enc_t, dec_t = reference_forward(xr, w1r, b1, w2r, b2)
    assert jnp.allclose(enc, enc_t, atol=2e-3, rtol=2e-3), \
        float(jnp.max(jnp.abs(enc - enc_t)))
    assert jnp.allclose(dec, dec_t, atol=2e-3, rtol=2e-3), \
        float(jnp.max(jnp.abs(dec - dec_t)))

    # Loose check vs. the pure-f32 PyTorch-equivalent math (bf16 weight cast
    # is a deliberate perf choice).
    enc_f, dec_f = reference_forward(x, w1, b1, w2, b2)
    assert jnp.allclose(enc, enc_f, atol=5e-2, rtol=5e-2)
    assert jnp.allclose(dec, dec_f, atol=5e-2, rtol=5e-2)

    print("KERNEL_OK")
</pallas_src>

<mosaic_0001>
module attributes {stable_mosaic.version = 11 : i64} {
  func.func @autoencoder_kernel(%arg0: i32, %arg1: memref<8x2048xbf16, #tpu.memory_space<vmem>>, %arg2: memref<2048x50xbf16, #tpu.memory_space<vmem>>, %arg3: memref<1x50xf32, #tpu.memory_space<vmem>>, %arg4: memref<50x512xbf16, #tpu.memory_space<vmem>>, %arg5: memref<1x512xf32, #tpu.memory_space<vmem>>, %arg6: memref<8x50xf32, #tpu.memory_space<vmem>>, %arg7: memref<8x512xf32, #tpu.memory_space<vmem>>, %arg8: memref<8x50xf32, #tpu.memory_space<vmem>>) attributes {dimension_semantics = [#tpu.dimension_semantics<arbitrary>], iteration_bounds = array<i64: 4>, scalar_prefetch = 0 : i64, scratch_operands = 1 : i64, tpu.core_type = #tpu.core_type<tc>, window_params = [{pipeline_mode = #tpu.pipeline_mode<synchronous>, transform_indices = @transform_0, window_bounds = array<i64: 8, 2048>}, {pipeline_mode = #tpu.pipeline_mode<synchronous>, transform_indices = @transform_1, window_bounds = array<i64: 2048, 50>}, {pipeline_mode = #tpu.pipeline_mode<synchronous>, transform_indices = @transform_2, window_bounds = array<i64: 1, 50>}, {transform_indices = @transform_3, window_bounds = array<i64: 50, 512>}, {transform_indices = @transform_4, window_bounds = array<i64: 1, 512>}, {pipeline_mode = #tpu.pipeline_mode<synchronous>, transform_indices = @transform_5, window_bounds = array<i64: 8, 50>}, {transform_indices = @transform_6, window_bounds = array<i64: 8, 512>}]} {
    %c0_i32 = arith.constant 0 : i32
    %0 = arith.cmpi eq, %arg0, %c0_i32 : i32
    %1 = arith.extui %0 : i1 to i32
    %c0_i32_0 = arith.constant 0 : i32
    %2 = arith.cmpi ne, %1, %c0_i32_0 : i32
    scf.if %2 {
      %c0_9 = arith.constant 0 : index
      %c0_10 = arith.constant 0 : index
      %13 = vector.load %arg1[%c0_9, %c0_10] : memref<8x2048xbf16, #tpu.memory_space<vmem>>, vector<8x2048xbf16>
      %c0_11 = arith.constant 0 : index
      %c0_12 = arith.constant 0 : index
      %14 = vector.load %arg2[%c0_11, %c0_12] : memref<2048x50xbf16, #tpu.memory_space<vmem>>, vector<2048x50xbf16>
      %cst_13 = arith.constant dense<0.000000e+00> : vector<8x50xf32>
      %15 = tpu.matmul %13, %14, %cst_13 {dimension_numbers = #tpu.dot_dimension_numbers<[1], [0], [0], [1], [0, 0, 1, 1], [], []>} : vector<8x2048xbf16>, vector<2048x50xbf16>, vector<8x50xf32> -> vector<8x50xf32>
      %c0_14 = arith.constant 0 : index
      %c0_15 = arith.constant 0 : index
      %16 = vector.load %arg3[%c0_14, %c0_15] : memref<1x50xf32, #tpu.memory_space<vmem>>, vector<1x50xf32>
      %17 = vector.broadcast %16 : vector<1x50xf32> to vector<8x50xf32>
      %18 = arith.addf %15, %17 : vector<8x50xf32>
      %cst_16 = arith.constant 0.000000e+00 : f32
      %19 = vector.broadcast %cst_16 : f32 to vector<8x50xf32>
      %20 = arith.maximumf %18, %19 : vector<8x50xf32>
      %c0_17 = arith.constant 0 : index
      %c0_18 = arith.constant 0 : index
      %21 = vector.load %arg8[%c0_17, %c0_18] : memref<8x50xf32, #tpu.memory_space<vmem>>, vector<8x50xf32>
      tpu.vector_store %arg8[%c0_17, %c0_18], %20 {strides = array<i32>} : memref<8x50xf32, #tpu.memory_space<vmem>>, vector<8x50xf32>,
      %c0_19 = arith.constant 0 : index
      %c0_20 = arith.constant 0 : index
      %22 = vector.load %arg6[%c0_19, %c0_20] : memref<8x50xf32, #tpu.memory_space<vmem>>, vector<8x50xf32>
      tpu.vector_store %arg6[%c0_19, %c0_20], %20 {strides = array<i32>} : memref<8x50xf32, #tpu.memory_space<vmem>>, vector<8x50xf32>,
    } else {
    }
    %c0 = arith.constant 0 : index
    %c0_1 = arith.constant 0 : index
    %3 = vector.load %arg8[%c0, %c0_1] : memref<8x50xf32, #tpu.memory_space<vmem>>, vector<8x50xf32>
    %c0_2 = arith.constant 0 : index
    %c0_3 = arith.constant 0 : index
    %4 = vector.load %arg4[%c0_2, %c0_3] : memref<50x512xbf16, #tpu.memory_space<vmem>>, vector<50x512xbf16>
    %5 = arith.extf %4 : vector<50x512xbf16> to vector<50x512xf32>
    %cst = arith.constant dense<0.000000e+00> : vector<8x512xf32>
    %6 = tpu.matmul %3, %5, %cst {dimension_numbers = #tpu.dot_dimension_numbers<[1], [0], [0], [1], [0, 0, 1, 1], [], []>} : vector<8x50xf32>, vector<50x512xf32>, vector<8x512xf32> -> vector<8x512xf32>
    %c0_4 = arith.constant 0 : index
    %c0_5 = arith.constant 0 : index
    %7 = vector.load %arg5[%c0_4, %c0_5] : memref<1x512xf32, #tpu.memory_space<vmem>>, vector<1x512xf32>
    %8 = vector.broadcast %7 : vector<1x512xf32> to vector<8x512xf32>
    %9 = arith.addf %6, %8 : vector<8x512xf32>
    %cst_6 = arith.constant 0.000000e+00 : f32
    %10 = vector.broadcast %cst_6 : f32 to vector<8x512xf32>
    %11 = arith.maximumf %9, %10 : vector<8x512xf32>
    %c0_7 = arith.constant 0 : index
    %c0_8 = arith.constant 0 : index
    %12 = vector.load %arg7[%c0_7, %c0_8] : memref<8x512xf32, #tpu.memory_space<vmem>>, vector<8x512xf32>
    tpu.vector_store %arg7[%c0_7, %c0_8], %11 {strides = array<i32>} : memref<8x512xf32, #tpu.memory_space<vmem>>, vector<8x512xf32>,
    return
  }
  func.func @transform_0(%arg0: i32) -> (i32, i32) {
    %c0_i32 = arith.constant 0 : i32
    %c0_i32_0 = arith.constant 0 : i32
    %c0_i32_1 = arith.constant 0 : i32
    return %c0_i32, %c0_i32_0 : i32, i32
  }
  func.func @transform_1(%arg0: i32) -> (i32, i32) {
    %c0_i32 = arith.constant 0 : i32
    %c0_i32_0 = arith.constant 0 : i32
    %c0_i32_1 = arith.constant 0 : i32
    return %c0_i32, %c0_i32_0 : i32, i32
  }
  func.func @transform_2(%arg0: i32) -> (i32, i32) {
    %c0_i32 = arith.constant 0 : i32
    %c0_i32_0 = arith.constant 0 : i32
    %c0_i32_1 = arith.constant 0 : i32
    return %c0_i32, %c0_i32_0 : i32, i32
  }
  func.func @transform_3(%arg0: i32) -> (i32, i32) {
    %c0_i32 = arith.constant 0 : i32
    %c0_i32_0 = arith.constant 0 : i32
    return %c0_i32, %arg0 : i32, i32
  }
  func.func @transform_4(%arg0: i32) -> (i32, i32) {
    %c0_i32 = arith.constant 0 : i32
    %c0_i32_0 = arith.constant 0 : i32
    return %c0_i32, %arg0 : i32, i32
  }
  func.func @transform_5(%arg0: i32) -> (i32, i32) {
    %c0_i32 = arith.constant 0 : i32
    %c0_i32_0 = arith.constant 0 : i32
    %c0_i32_1 = arith.constant 0 : i32
    return %c0_i32, %c0_i32_0 : i32, i32
  }
  func.func @transform_6(%arg0: i32) -> (i32, i32) {
    %c0_i32 = arith.constant 0 : i32
    %c0_i32_0 = arith.constant 0 : i32
    return %c0_i32, %arg0 : i32, i32
  }
}

</mosaic_0001>

<bundles_post_ra>
// kernel: tpu_custom_call.1
= control target key start
LH: loop header
LB: loop body
LE: loop exit
PB: predicated region body
PF: predicated region fallthrough
CT: control target
= control target key end

     0   :  { %12 = vsyncpa [#allocation5], 0  ;;  %s3387_s0 = inlined_call_operand.vmem [shape: bf16[8,2048], index: 0, kind: input, shape index: {}]   ;;  %s3388_s1 = inlined_call_operand.vmem [shape: bf16[2048,50], index: 1, kind: input, shape index: {}]   ;;  %s3389_s2 = inlined_call_operand.vmem [shape: f32[1,50], index: 2, kind: input, shape index: {}]   ;;  %s3390_s3 = inlined_call_operand.vmem [shape: bf16[50,2048], index: 3, kind: input, shape index: {}]   ;;  %s3391_s4 = inlined_call_operand.vmem [shape: f32[1,2048], index: 4, kind: input, shape index: {}]   ;;  %s3392_s5 = inlined_call_operand.hbm [shape: f32[8,50], index: 5, kind: output, shape index: {0}]   ;;  %s3393_s6 = inlined_call_operand.hbm [shape: f32[8,2048], index: 6, kind: output, shape index: {1}]  }
   0x1   :  { %13 = vsyncpa [#allocation7], 0 }
   0x2   :  { %15 = vsyncpa [#allocation7 + $0x1], 0  ;;  %s2809_s21 = smov 0   ;;  %s2811_s22 = smov 0  }
   0x3   :  { %s2813_s23 = smov 0   ;;  %s2815_s24 = smov 0  }
   0x4 LB: > { %s2830_s25 = sadd.s32 4294967295, %s2769_s24   ;;  %s2085_s26 = sadd.s32 4294967294, %s2769_s24   ;;  %s2769_s24 = sphi %s2815_s24, %s3399_s24   ;;  %s2765_s23 = sphi %s2813_s23, %s3398_s23   ;;  %s2761_s22 = sphi %s2811_s22, %s3397_s22   ;;  %s2757_s21 = sphi %s2809_s21, %s3396_s21  }
   0x5   : > { %s2834_s27 = sadd.s32 1, %s2769_s24   ;;  %s91_s28 = sadd.s32 1, %s2765_s23 }
   0x6   : > { %s88_s29 = ssub.s32 %s2769_s24, %s2834_s27  ;;  %p98_p0 = scmp.ne.s32.totalorder %s2765_s23, %s2761_s22 }
   0x7   : > { %p89_p1 = scmp.eq.s32.totalorder %s88_s29, 0  ;;  %p99_p2 = scmp.eq.s32.totalorder %s2769_s24, 0 }
   0x8   : > { %p175_p3 = scmp.eq.s32.totalorder %s2830_s25, 3  ;;  %p180_p4 = scmp.ne.s32.totalorder %s2761_s22, %s2757_s21 }
   0x9   : > { %s2846_s30 = scalar_select %p89_p1, %s2765_s23, %s91_s28  }
   0xa   : > { %p100_p5 = por %p99_p2, %p98_p0  ;;  %p2850_p6 = por %p175_p3, %p98_p0 }
   0xb   : > { %p181_p7 = scmp.eq.s32.totalorder %s2085_s26, 3  ;;  %p2087_p9 = scmp.ge.s32.totalorder %s2769_s24, 4 }
   0xd   : > { %p2854_p8 = por %p181_p7, %p180_p4  ;;  %206 = sbr.rel (%p2087_p9) target bundleno = 31 (0x1f), region = 28 }
  0x14   : > { %209 = sbr.rel (!%p100_p5) target bundleno = 31 (0x1f), region = 32  ;;  %s211_s9 = sand.u32 (%p100_p5), 1, %s2765_s23  }
  0x15   : > { %s2252_s10 = sshll.u32 (%p100_p5), %s2769_s24, 4  ;;  %s2466_s11 = smul.u32 (%p100_p5), 112, %s211_s9 }
  0x16   : > { %s216_s14 = scalar_lea.vmem (%p100_p5), %s3390_s3, %s2252_s10 }
  0x17   : > { %v229_v0 = vld [vmem:[%s216_s14] sm:$0xff] (%p100_p5)  ;;  %v231_v1 = vld [vmem:[%s216_s14 + $0x8] sm:$0xff] (%p100_p5)  ;;  %s213_s15 = scalar_lea.vmem (%p100_p5), [#allocation3], %s2466_s11 }
  0x18   : > { %v233_v2 = vld [vmem:[%s216_s14 + $0x40] sm:$0xff] (%p100_p5)  ;;  %v235_v3 = vld [vmem:[%s216_s14 + $0x48] sm:$0xff] (%p100_p5)  ;;  %230 = vst [vmem:[%s213_s15] sm:$0xff] (%p100_p5), %v229_v0  ;;  %232 = vst [vmem:[%s213_s15 + $0x8] sm:$0xff] (%p100_p5), %v231_v1 }
  0x19   : > { %v237_v4 = vld [vmem:[%s216_s14 + $0x80] sm:$0xff] (%p100_p5)  ;;  %v239_v5 = vld [vmem:[%s216_s14 + $0x88] sm:$0xff] (%p100_p5)  ;;  %234 = vst [vmem:[%s213_s15 + $0x10] sm:$0xff] (%p100_p5), %v233_v2  ;;  %236 = vst [vmem:[%s213_s15 + $0x18] sm:$0xff] (%p100_p5), %v235_v3 }
  0x1a   : > { %238 = vst [vmem:[%s213_s15 + $0x20] sm:$0xff] (%p100_p5), %v237_v4  ;;  %240 = vst [vmem:[%s213_s15 + $0x28] sm:$0xff] (%p100_p5), %v239_v5  ;;  %v241_v6 = vld [vmem:[%s216_s14 + $0xc0] sm:$0xff] (%p100_p5)  ;;  %v243_v7 = vld [vmem:[%s216_s14 + $0xc8] sm:$0xff] (%p100_p5) }
  0x1b   : > { %v245_v8 = vld [vmem:[%s216_s14 + $0x100] sm:$0xff]  ;;  %242 = vst [vmem:[%s213_s15 + $0x30] sm:$0xff] %v241_v6  ;;  %244 = vst [vmem:[%s213_s15 + $0x38] sm:$0xff] %v243_v7  ;;  %v247_v9 = vld [vmem:[%s216_s14 + $0x108] sm:$0xff] }
  0x1c   : > { %246 = vst [vmem:[%s213_s15 + $0x40] sm:$0xff] %v245_v8  ;;  %v249_v10 = vld [vmem:[%s216_s14 + $0x140] sm:$0xff]  ;;  %v251_v11 = vld [vmem:[%s216_s14 + $0x148] sm:$0xff]  ;;  %248 = vst [vmem:[%s213_s15 + $0x48] sm:$0xff] %v247_v9 }
  0x1d   : > { %250 = vst [vmem:[%s213_s15 + $0x50] sm:$0xff] %v249_v10  ;;  %252 = vst [vmem:[%s213_s15 + $0x58] sm:$0xff] %v251_v11  ;;  %v253_v12 = vld [vmem:[%s216_s14 + $0x180] sm:$0xff]  ;;  %v255_v13 = vld [vmem:[%s216_s14 + $0x188] sm:$0xff] }
  0x1e   : > { %254 = vst [vmem:[%s213_s15 + $0x60] sm:$0xff] %v253_v12  ;;  %256 = vst [vmem:[%s213_s15 + $0x68] sm:$0xff] %v255_v13 }
  0x1f PF: > { %p2090_p10 = scmp.ge.s32.totalorder %s2769_s24, 1  ;;  %p269_p11 = scmp.lt.s32.totalorder %s2769_s24, 5 }
  0x21   : > { %p270_p12 = pnand %p2090_p10, %p269_p11 }
  0x22   : > { %s2867_s16 = sand.u32 (!%p270_p12), 1, %s2761_s22   ;;  %s2092_s17 = sshll.u32 (!%p270_p12), %s2830_s25, 2 }
  0x23   : > { %273 = sbr.rel (%p270_p12) target bundleno = 644 (0x284), region = 59  ;;  %s2091_s19 = sshll.u32 (!%p270_p12), %s2867_s16, 5 }
  0x24   : > { %s2467_s18 = smul.u32 (!%p270_p12), 112, %s2867_s16  ;;  %p311_p13 = scmp.lt.s32.totalorder (!%p270_p12), %s2092_s17, 15 }
  0x25   : > { %s2880_s9 = scalar_lea.vmem (!%p270_p12), [#allocation6], %s2091_s19  ;;  %p2093_p0 = scmp.ne.s32.totalorder (!%p270_p12), %s2830_s25, 0 }
  0x26   : > { %s2878_s29 = scalar_lea.vmem (!%p270_p12), [#allocation3], %s2467_s18 }
  0x2a   : > { %s3401_s17 = smov (!%p311_p13, %s2092_s17), 15  ;;  %320 = sbr.rel (%p2093_p0) target bundleno = 395 (0x18b), region = 67 }
  0x2b   : > { %s313_s28 = scalar_lea.vmem %s3391_s4, %s3401_s17  ;;  %v2515_v14 = vld [vmem:[%s3388_s1 + $0x40] sm:$0xff] (!%p2093_p0)   ;;  %v2519_v18 = vld [vmem:[%s3388_s1 + $0x48] sm:$0xff] (!%p2093_p0)   ;;  %v2523_v22 = vld [vmem:[%s3388_s1 + $0x50] sm:$0xff] (!%p2093_p0)   ;;  %vm1737_vm0 = vcmask (!%p2093_p0), 408576  }
  0x2c   : > { %v2516_v15 = vld [vmem:[%s3388_s1 + $0xc0] sm:$0xff] (!%p2093_p0)   ;;  %2254 = vmatprep.subr.bf16.mxu0 (!%p2093_p0), %v2515_v14  ;;  %v2520_v19 = vld [vmem:[%s3388_s1 + $0xc8] sm:$0xff] (!%p2093_p0)   ;;  %v2524_v23 = vld [vmem:[%s3388_s1 + $0xd0] sm:$0xff] (!%p2093_p0)  }
  0x2d   : > { %v2517_v16 = vld [vmem:[%s3388_s1] sm:$0xff] (!%p2093_p0)   ;;  %2276 = vmatprep.subr.bf16.mxu1 (!%p2093_p0), %v2516_v15  ;;  %v2521_v20 = vld [vmem:[%s3388_s1 + $0x8] sm:$0xff] (!%p2093_p0)   ;;  %v2525_v24 = vld [vmem:[%s3388_s1 + $0x10] sm:$0xff] (!%p2093_p0)  }
  0x2e   : > { %v2518_v17 = vld [vmem:[%s3388_s1 + $0x80] sm:$0xff] (!%p2093_p0)   ;;  %2255 = vmatpush3.bf16.msra.mxu0 (!%p2093_p0), %v2517_v16  ;;  %v2522_v21 = vld [vmem:[%s3388_s1 + $0x88] sm:$0xff] (!%p2093_p0)   ;;  %v2526_v25 = vld [vmem:[%s3388_s1 + $0x90] sm:$0xff] (!%p2093_p0)  }
  0x2f   : > { %2277 = vmatpush3.bf16.msra.mxu1 (!%p2093_p0), %v2518_v17  ;;  %2256 = vmatprep.subr.bf16.mxu0 (!%p2093_p0), %v2519_v18  ;;  %v2527_v26 = vld [vmem:[%s3388_s1 + $0x58] sm:$0xff] (!%p2093_p0)   ;;  %v2531_v30 = vld [vmem:[%s3388_s1 + $0x60] sm:$0xff] (!%p2093_p0)   ;;  %v2535_v34 = vld [vmem:[%s3388_s1 + $0x68] sm:$0xff] (!%p2093_p0)  }
  0x30   : > { %2278 = vmatprep.subr.bf16.mxu1 (!%p2093_p0), %v2520_v19  ;;  %v2528_v27 = vld [vmem:[%s3388_s1 + $0xd8] sm:$0xff] (!%p2093_p0)   ;;  %v2532_v31 = vld [vmem:[%s3388_s1 + $0xe0] sm:$0xff] (!%p2093_p0)   ;;  %v2536_v35 = vld [vmem:[%s3388_s1 + $0xe8] sm:$0xff] (!%p2093_p0)  }
  0x31   : > { %v2529_v28 = vld [vmem:[%s3388_s1 + $0x18] sm:$0xff]   ;;  %v2533_v32 = vld [vmem:[%s3388_s1 + $0x20] sm:$0xff]   ;;  %v2537_v36 = vld [vmem:[%s3388_s1 + $0x28] sm:$0xff]  }
  0x32   : > { %2257 = vmatpush3.bf16.msra.mxu0 %v2521_v20  ;;  %v2530_v29 = vld [vmem:[%s3388_s1 + $0x98] sm:$0xff]   ;;  %v2534_v33 = vld [vmem:[%s3388_s1 + $0xa0] sm:$0xff]   ;;  %v2538_v37 = vld [vmem:[%s3388_s1 + $0xa8] sm:$0xff]  }
  0x33   : > { %2279 = vmatpush3.bf16.msra.mxu1 %v2522_v21  ;;  %2258 = vmatprep.subr.bf16.mxu0 %v2523_v22  ;;  %v2539_v38 = vld [vmem:[%s3388_s1 + $0x70] sm:$0xff]   ;;  %v2543_v42 = vld [vmem:[%s3388_s1 + $0x78] sm:$0xff]   ;;  %v321_v46 = vld [vmem:[%s3387_s0] sm:$0xff] }
  0x34   : > { %2280 = vmatprep.subr.bf16.mxu1 %v2524_v23  ;;  %v2540_v39 = vld [vmem:[%s3388_s1 + $0xf0] sm:$0xff]   ;;  %v2544_v43 = vld [vmem:[%s3388_s1 + $0xf8] sm:$0xff]   ;;  %v322_v47 = vld [vmem:[%s3387_s0 + $0x8] sm:$0xff]  ;;  %v2095_v48 = vcombine.low %v321_v46, %v321_v46  ;;  %v2096_v49 = vcombine.high %v321_v46, %v321_v46 }
  0x35   : > { %v2541_v40 = vld [vmem:[%s3388_s1 + $0x30] sm:$0xff]   ;;  %v2545_v44 = vld [vmem:[%s3388_s1 + $0x38] sm:$0xff]   ;;  %v2097_v50 = vcombine.low %v322_v47, %v322_v47  ;;  %v2098_v51 = vcombine.high %v322_v47, %v322_v47  ;;  %v2551_v52 = vld [vmem:[%s3388_s1 + $0x140] sm:$0xff]  }
  0x36   : > { %2259 = vmatpush3.bf16.msra.mxu0 %v2525_v24  ;;  %v2542_v41 = vld [vmem:[%s3388_s1 + $0xb0] sm:$0xff]   ;;  %v2546_v45 = vld [vmem:[%s3388_s1 + $0xb8] sm:$0xff]   ;;  %v2552_v53 = vld [vmem:[%s3388_s1 + $0x1c0] sm:$0xff]   ;;  %1448 = vmatprep.mubr.bf16.mxu0 %v2096_v49 }
  0x37   : > { %2281 = vmatpush3.bf16.msra.mxu1 %v2526_v25  ;;  %2260 = vmatprep.subr.bf16.mxu0 %v2527_v26  ;;  %v2553_v54 = vld [vmem:[%s3388_s1 + $0x100] sm:$0xff]   ;;  %v2555_v56 = vld [vmem:[%s3388_s1 + $0x148] sm:$0xff]   ;;  %v2559_v60 = vld [vmem:[%s3388_s1 + $0x150] sm:$0xff]  }
  0x38   : > { %2282 = vmatprep.subr.bf16.mxu1 %v2528_v27  ;;  %1488 = vmatprep.mubr.bf16.mxu1 %v2098_v51  ;;  %v2554_v55 = vld [vmem:[%s3388_s1 + $0x180] sm:$0xff]   ;;  %v2556_v57 = vld [vmem:[%s3388_s1 + $0x1c8] sm:$0xff]   ;;  %v2560_v61 = vld [vmem:[%s3388_s1 + $0x1d0] sm:$0xff]  }
  0x39   : > { %v2557_v58 = vld [vmem:[%s3388_s1 + $0x108] sm:$0xff]   ;;  %v2561_v62 = vld [vmem:[%s3388_s1 + $0x110] sm:$0xff]   ;;  %v2563_v0 = vld [vmem:[%s3388_s1 + $0x158] sm:$0xff]  }
  0x3a   : > { %2261 = vmatpush3.bf16.msra.mxu0 %v2529_v28  ;;  %v2558_v59 = vld [vmem:[%s3388_s1 + $0x188] sm:$0xff]   ;;  %v2562_v63 = vld [vmem:[%s3388_s1 + $0x190] sm:$0xff]   ;;  %v2564_v1 = vld [vmem:[%s3388_s1 + $0x1d8] sm:$0xff]  }
  0x3b   : > { %2283 = vmatpush3.bf16.msra.mxu1 %v2530_v29  ;;  %2262 = vmatprep.subr.bf16.mxu0 %v2531_v30  ;;  %v2565_v2 = vld [vmem:[%s3388_s1 + $0x118] sm:$0xff]   ;;  %v2567_v4 = vld [vmem:[%s3388_s1 + $0x160] sm:$0xff]   ;;  %v2571_v8 = vld [vmem:[%s3388_s1 + $0x168] sm:$0xff]  }
  0x3c   : > { %2284 = vmatprep.subr.bf16.mxu1 %v2532_v31  ;;  %v2566_v3 = vld [vmem:[%s3388_s1 + $0x198] sm:$0xff]   ;;  %v2568_v5 = vld [vmem:[%s3388_s1 + $0x1e0] sm:$0xff]   ;;  %v2572_v9 = vld [vmem:[%s3388_s1 + $0x1e8] sm:$0xff]  }
  0x3d   : > { %v2569_v6 = vld [vmem:[%s3388_s1 + $0x120] sm:$0xff]   ;;  %v2573_v10 = vld [vmem:[%s3388_s1 + $0x128] sm:$0xff]   ;;  %v2575_v12 = vld [vmem:[%s3388_s1 + $0x170] sm:$0xff]  }
  0x3e   : > { %2263 = vmatpush3.bf16.msra.mxu0 %v2533_v32  ;;  %v2570_v7 = vld [vmem:[%s3388_s1 + $0x1a0] sm:$0xff]   ;;  %v2574_v11 = vld [vmem:[%s3388_s1 + $0x1a8] sm:$0xff]   ;;  %v2576_v13 = vld [vmem:[%s3388_s1 + $0x1f0] sm:$0xff]  }
  0x3f   : > { %2285 = vmatpush3.bf16.msra.mxu1 %v2534_v33  ;;  %2264 = vmatprep.subr.bf16.mxu0 %v2535_v34  ;;  %v2577_v14 = vld [vmem:[%s3388_s1 + $0x130] sm:$0xff]   ;;  %v2579_v16 = vld [vmem:[%s3388_s1 + $0x178] sm:$0xff]   ;;  %v2587_v26 = vld [vmem:[%s3388_s1 + $0x240] sm:$0xff]  }
  0x40   : > { %2286 = vmatprep.subr.bf16.mxu1 %v2536_v35  ;;  %v2578_v15 = vld [vmem:[%s3388_s1 + $0x1b0] sm:$0xff]   ;;  %v2580_v17 = vld [vmem:[%s3388_s1 + $0x1f8] sm:$0xff]   ;;  %v2588_v27 = vld [vmem:[%s3388_s1 + $0x2c0] sm:$0xff]  }
  0x41   : > { %v2581_v18 = vld [vmem:[%s3388_s1 + $0x138] sm:$0xff]   ;;  %v323_v20 = vld [vmem:[%s3387_s0 + $0x10] sm:$0xff]  ;;  %v2589_v28 = vld [vmem:[%s3388_s1 + $0x200] sm:$0xff]  }
  0x42   : > { %2265 = vmatpush3.bf16.msra.mxu0 %v2537_v36  ;;  %v2582_v19 = vld [vmem:[%s3388_s1 + $0x1b8] sm:$0xff]   ;;  %v2099_v21 = vcombine.low %v323_v20, %v323_v20  ;;  %v2100_v22 = vcombine.high %v323_v20, %v323_v20  ;;  %v2590_v29 = vld [vmem:[%s3388_s1 + $0x280] sm:$0xff]   ;;  %v2591_v30 = vld [vmem:[%s3388_s1 + $0x248] sm:$0xff]  }
  0x43   : > { %2287 = vmatpush3.bf16.msra.mxu1 %v2538_v37  ;;  %2266 = vmatprep.subr.bf16.mxu0 %v2539_v38  ;;  %v324_v23 = vld [vmem:[%s3387_s0 + $0x18] sm:$0xff]  ;;  %v2592_v31 = vld [vmem:[%s3388_s1 + $0x2c8] sm:$0xff]   ;;  %v2595_v34 = vld [vmem:[%s3388_s1 + $0x250] sm:$0xff]  }
  0x44   : > { %2288 = vmatprep.subr.bf16.mxu1 %v2540_v39  ;;  %v2101_v24 = vcombine.low %v324_v23, %v324_v23  ;;  %v2102_v25 = vcombine.high %v324_v23, %v324_v23  ;;  %v2593_v32 = vld [vmem:[%s3388_s1 + $0x208] sm:$0xff]   ;;  %v2596_v35 = vld [vmem:[%s3388_s1 + $0x2d0] sm:$0xff]   ;;  %v2599_v38 = vld [vmem:[%s3388_s1 + $0x258] sm:$0xff]  }
  0x45   : > { %v2594_v33 = vld [vmem:[%s3388_s1 + $0x288] sm:$0xff]   ;;  %v2597_v36 = vld [vmem:[%s3388_s1 + $0x210] sm:$0xff]   ;;  %v2600_v39 = vld [vmem:[%s3388_s1 + $0x2d8] sm:$0xff]  }
  0x46   : > { %2267 = vmatpush3.bf16.msra.mxu0 %v2541_v40  ;;  %v2598_v37 = vld [vmem:[%s3388_s1 + $0x290] sm:$0xff]   ;;  %v2601_v40 = vld [vmem:[%s3388_s1 + $0x218] sm:$0xff]   ;;  %v2607_v46 = vld [vmem:[%s3388_s1 + $0x268] sm:$0xff]  }
  0x47   : > { %2289 = vmatpush3.bf16.msra.mxu1 %v2542_v41  ;;  %2268 = vmatprep.subr.bf16.mxu0 %v2543_v42  ;;  %v2602_v41 = vld [vmem:[%s3388_s1 + $0x298] sm:$0xff]   ;;  %v2603_v42 = vld [vmem:[%s3388_s1 + $0x260] sm:$0xff]   ;;  %v2608_v47 = vld [vmem:[%s3388_s1 + $0x2e8] sm:$0xff]  }
  0x48   : > { %2290 = vmatprep.subr.bf16.mxu1 %v2544_v43  ;;  %v2604_v43 = vld [vmem:[%s3388_s1 + $0x2e0] sm:$0xff]   ;;  %v2610_v49 = vld [vmem:[%s3388_s1 + $0x2a8] sm:$0xff]   ;;  %v2612_v51 = vld [vmem:[%s3388_s1 + $0x2f0] sm:$0xff]  }
  0x49   : > { %v2643_v20 = vld [vmem:[%s3388_s1 + $0x368] sm:$0xff]  }
  0x4a   : > { %2269 = vmatpush3.bf16.msra.mxu0 %v2545_v44  ;;  %v2605_v44 = vld [vmem:[%s3388_s1 + $0x220] sm:$0xff]   ;;  %v2646_v23 = vld [vmem:[%s3388_s1 + $0x3a8] sm:$0xff]  }
  0x4b   : > { %2291 = vmatpush3.bf16.msra.mxu1 %v2546_v45  ;;  %2298 = vmatprep.subr.bf16.mxu0 %v2551_v52  ;;  %v2606_v45 = vld [vmem:[%s3388_s1 + $0x2a0] sm:$0xff]   ;;  %v2613_v52 = vld [vmem:[%s3388_s1 + $0x230] sm:$0xff]  }
  0x4c   : > { %2320 = vmatprep.subr.bf16.mxu1 %v2552_v53  ;;  %v2614_v53 = vld [vmem:[%s3388_s1 + $0x2b0] sm:$0xff]  }
  0x4d   : > { %1449 = vmatmul.mubr.bf16.vlgmr.msra.gmra.mrb[0].mxu0 %v2095_v48  ;;  %v2609_v48 = vld [vmem:[%s3388_s1 + $0x228] sm:$0xff]  }
  0x4e   : > { %1489 = vmatmul.mubr.bf16.vlgmr.msra.gmra.mrb[0].mxu1 %v2097_v50  ;;  %2299 = vmatpush3.bf16.msra.mxu0 %v2553_v54  ;;  %v2611_v50 = vld [vmem:[%s3388_s1 + $0x270] sm:$0xff]   ;;  %v2615_v54 = vld [vmem:[%s3388_s1 + $0x278] sm:$0xff]  }
  0x4f   : > { %2321 = vmatpush3.bf16.msra.mxu1 %v2554_v55  ;;  %2300 = vmatprep.subr.bf16.mxu0 %v2555_v56  ;;  %v2616_v55 = vld [vmem:[%s3388_s1 + $0x2f8] sm:$0xff]  }
  0x50   : > { %2322 = vmatprep.subr.bf16.mxu1 %v2556_v57  ;;  %1528 = vmatprep.mubr.bf16.mxu0 %v2100_v22  ;;  %v2617_v56 = vld [vmem:[%s3388_s1 + $0x238] sm:$0xff]   ;;  %v2645_v22 = vld [vmem:[%s3388_s1 + $0x328] sm:$0xff]  }
  0x51   : > { %1568 = vmatprep.mubr.bf16.mxu1 %v2102_v25  ;;  %v2618_v57 = vld [vmem:[%s3388_s1 + $0x2b8] sm:$0xff]   ;;  %v2648_v25 = vld [vmem:[%s3388_s1 + $0x3f0] sm:$0xff]  }
  0x52   : > { %2301 = vmatpush3.bf16.msra.mxu0 %v2557_v58  ;;  %v325_v58 = vld [vmem:[%s3387_s0 + $0x20] sm:$0xff] }
  0x53   : > { %2323 = vmatpush3.bf16.msra.mxu1 %v2558_v59  ;;  %2302 = vmatprep.subr.bf16.mxu0 %v2559_v60  ;;  %v326_v59 = vld [vmem:[%s3387_s0 + $0x28] sm:$0xff]  ;;  %v2103_v60 = vcombine.low %v325_v58, %v325_v58 }
  0x54   : > { %2324 = vmatprep.subr.bf16.mxu1 %v2560_v61  ;;  %v2104_v61 = vcombine.high %v325_v58, %v325_v58 }
  0x56   : > { %2303 = vmatpush3.bf16.msra.mxu0 %v2561_v62  ;;  %v2105_v62 = vcombine.low %v326_v59, %v326_v59 }
  0x57   : > { %2325 = vmatpush3.bf16.msra.mxu1 %v2562_v63  ;;  %2304 = vmatprep.subr.bf16.mxu0 %v2563_v0  ;;  %v2106_v63 = vcombine.high %v326_v59, %v326_v59  ;;  %v2623_v0 = vld [vmem:[%s3388_s1 + $0x340] sm:$0xff]  }
  0x58   : > { %2326 = vmatprep.subr.bf16.mxu1 %v2564_v1  ;;  %v2624_v1 = vld [vmem:[%s3388_s1 + $0x3c0] sm:$0xff]  }
  0x5a   : > { %2305 = vmatpush3.bf16.msra.mxu0 %v2565_v2  ;;  %v2625_v2 = vld [vmem:[%s3388_s1 + $0x300] sm:$0xff]  }
  0x5b   : > { %2327 = vmatpush3.bf16.msra.mxu1 %v2566_v3  ;;  %2306 = vmatprep.subr.bf16.mxu0 %v2567_v4  ;;  %v2626_v3 = vld [vmem:[%s3388_s1 + $0x380] sm:$0xff]   ;;  %v2627_v4 = vld [vmem:[%s3388_s1 + $0x348] sm:$0xff]  }
  0x5c   : > { %2328 = vmatprep.subr.bf16.mxu1 %v2568_v5  ;;  %v2628_v5 = vld [vmem:[%s3388_s1 + $0x3c8] sm:$0xff]  }
  0x5e   : > { %2307 = vmatpush3.bf16.msra.mxu0 %v2569_v6  ;;  %v2629_v6 = vld [vmem:[%s3388_s1 + $0x308] sm:$0xff]  }
  0x5f   : > { %2329 = vmatpush3.bf16.msra.mxu1 %v2570_v7  ;;  %2308 = vmatprep.subr.bf16.mxu0 %v2571_v8  ;;  %v2630_v7 = vld [vmem:[%s3388_s1 + $0x388] sm:$0xff]   ;;  %v2631_v8 = vld [vmem:[%s3388_s1 + $0x350] sm:$0xff]  }
  0x60   : > { %2330 = vmatprep.subr.bf16.mxu1 %v2572_v9  ;;  %v2632_v9 = vld [vmem:[%s3388_s1 + $0x3d0] sm:$0xff]  }
  0x62   : > { %2309 = vmatpush3.bf16.msra.mxu0 %v2573_v10  ;;  %v2633_v10 = vld [vmem:[%s3388_s1 + $0x310] sm:$0xff]  }
  0x63   : > { %2331 = vmatpush3.bf16.msra.mxu1 %v2574_v11  ;;  %2310 = vmatprep.subr.bf16.mxu0 %v2575_v12  ;;  %v2634_v11 = vld [vmem:[%s3388_s1 + $0x390] sm:$0xff]   ;;  %v2635_v12 = vld [vmem:[%s3388_s1 + $0x358] sm:$0xff]  }
  0x64   : > { %2332 = vmatprep.subr.bf16.mxu1 %v2576_v13  ;;  %v2636_v13 = vld [vmem:[%s3388_s1 + $0x3d8] sm:$0xff]  }
  0x66   : > { %2311 = vmatpush3.bf16.msra.mxu0 %v2577_v14  ;;  %v2637_v14 = vld [vmem:[%s3388_s1 + $0x318] sm:$0xff]  }
  0x67   : > { %2333 = vmatpush3.bf16.msra.mxu1 %v2578_v15  ;;  %2312 = vmatprep.subr.bf16.mxu0 %v2579_v16  ;;  %v2638_v15 = vld [vmem:[%s3388_s1 + $0x398] sm:$0xff]   ;;  %v2639_v16 = vld [vmem:[%s3388_s1 + $0x360] sm:$0xff]  }
  0x68   : > { %2334 = vmatprep.subr.bf16.mxu1 %v2580_v17  ;;  %v2640_v17 = vld [vmem:[%s3388_s1 + $0x3e0] sm:$0xff]  }
  0x6a   : > { %2313 = vmatpush3.bf16.msra.mxu0 %v2581_v18  ;;  %v2641_v18 = vld [vmem:[%s3388_s1 + $0x320] sm:$0xff]  }
  0x6b   : > { %2335 = vmatpush3.bf16.msra.mxu1 %v2582_v19  ;;  %2342 = vmatprep.subr.bf16.mxu0 %v2587_v26  ;;  %v2642_v19 = vld [vmem:[%s3388_s1 + $0x3a0] sm:$0xff]   ;;  %v2649_v26 = vld [vmem:[%s3388_s1 + $0x330] sm:$0xff]  }
  0x6c   : > { %2364 = vmatprep.subr.bf16.mxu1 %v2588_v27  ;;  %v2650_v27 = vld [vmem:[%s3388_s1 + $0x3b0] sm:$0xff]  }
  0x6d   : > { %1529 = vmatmul.mubr.bf16.vlgmr.msra.gmra.mrb[4].mxu0 %v2099_v21  ;;  %v2644_v21 = vld [vmem:[%s3388_s1 + $0x3e8] sm:$0xff]  }
  0x6e   : > { %1569 = vmatmul.mubr.bf16.vlgmr.msra.gmra.mrb[4].mxu1 %v2101_v24  ;;  %2343 = vmatpush3.bf16.msra.mxu0 %v2589_v28  ;;  %v2647_v24 = vld [vmem:[%s3388_s1 + $0x370] sm:$0xff]   ;;  %v2651_v28 = vld [vmem:[%s3388_s1 + $0x378] sm:$0xff]  }
  0x6f   : > { %2365 = vmatpush3.bf16.msra.mxu1 %v2590_v29  ;;  %2344 = vmatprep.subr.bf16.mxu0 %v2591_v30  ;;  %v2652_v29 = vld [vmem:[%s3388_s1 + $0x3f8] sm:$0xff]  }
  0x70   : > { %2366 = vmatprep.subr.bf16.mxu1 %v2592_v31  ;;  %1608 = vmatprep.mubr.bf16.mxu0 %v2104_v61  ;;  %v2653_v30 = vld [vmem:[%s3388_s1 + $0x338] sm:$0xff]  }
  0x71   : > { %1648 = vmatprep.mubr.bf16.mxu1 %v2106_v63  ;;  %v2654_v31 = vld [vmem:[%s3388_s1 + $0x3b8] sm:$0xff]  }
  0x72   : > { %2345 = vmatpush3.bf16.msra.mxu0 %v2593_v32  ;;  %v327_v32 = vld [vmem:[%s3387_s0 + $0x30] sm:$0xff] }
  0x73   : > { %2367 = vmatpush3.bf16.msra.mxu1 %v2594_v33  ;;  %2346 = vmatprep.subr.bf16.mxu0 %v2595_v34  ;;  %v328_v33 = vld [vmem:[%s3387_s0 + $0x38] sm:$0xff]  ;;  %v2107_v34 = vcombine.low %v327_v32, %v327_v32 }
  0x74   : > { %2368 = vmatprep.subr.bf16.mxu1 %v2596_v35  ;;  %v2108_v35 = vcombine.high %v327_v32, %v327_v32 }
  0x76   : > { %2347 = vmatpush3.bf16.msra.mxu0 %v2597_v36  ;;  %v2109_v36 = vcombine.low %v328_v33, %v328_v33 }
  0x77   : > { %2369 = vmatpush3.bf16.msra.mxu1 %v2598_v37  ;;  %2348 = vmatprep.subr.bf16.mxu0 %v2599_v38  ;;  %v2110_v37 = vcombine.high %v328_v33, %v328_v33 }
  0x78   : > { %2370 = vmatprep.subr.bf16.mxu1 %v2600_v39 }
  0x7a   : > { %2349 = vmatpush3.bf16.msra.mxu0 %v2601_v40  ;;  %v2094_v40 = vld [vmem:[%s3389_s2] ss:$0 sm:$0xff] }
  0x7b   : > { %2371 = vmatpush3.bf16.msra.mxu1 %v2602_v41  ;;  %2350 = vmatprep.subr.bf16.mxu0 %v2603_v42 }
  0x7c   : > { %2372 = vmatprep.subr.bf16.mxu1 %v2604_v43 }
  0x7e   : > { %2351 = vmatpush3.bf16.msra.mxu0 %v2605_v44 }
  0x7f   : > { %2373 = vmatpush3.bf16.msra.mxu1 %v2606_v45  ;;  %2352 = vmatprep.subr.bf16.mxu0 %v2607_v46 }
  0x80   : > { %2374 = vmatprep.subr.bf16.mxu1 %v2608_v47 }
  0x82   : > { %2353 = vmatpush3.bf16.msra.mxu0 %v2609_v48 }
  0x83   : > { %2375 = vmatpush3.bf16.msra.mxu1 %v2610_v49  ;;  %2354 = vmatprep.subr.bf16.mxu0 %v2611_v50 }
  0x84   : > { %2376 = vmatprep.subr.bf16.mxu1 %v2612_v51 }
  0x86   : > { %2355 = vmatpush3.bf16.msra.mxu0 %v2613_v52 }
  0x87   : > { %2377 = vmatpush3.bf16.msra.mxu1 %v2614_v53  ;;  %2356 = vmatprep.subr.bf16.mxu0 %v2615_v54 }
  0x88   : > { %2378 = vmatprep.subr.bf16.mxu1 %v2616_v55 }
  0x8a   : > { %2357 = vmatpush3.bf16.msra.mxu0 %v2617_v56 }
  0x8b   : > { %2379 = vmatpush3.bf16.msra.mxu1 %v2618_v57  ;;  %2386 = vmatprep.subr.bf16.mxu0 %v2623_v0 }
  0x8c   : > { %2408 = vmatprep.subr.bf16.mxu1 %v2624_v1 }
  0x8d   : > { %1609 = vmatmul.mubr.bf16.vlgmr.msra.gmra.mrb[8].mxu0 %v2103_v60 }
  0x8e   : > { %1649 = vmatmul.mubr.bf16.vlgmr.msra.gmra.mrb[8].mxu1 %v2105_v62  ;;  %2387 = vmatpush3.bf16.msra.mxu0 %v2625_v2 }
  0x8f   : > { %2409 = vmatpush3.bf16.msra.mxu1 %v2626_v3  ;;  %2388 = vmatprep.subr.bf16.mxu0 %v2627_v4 }
  0x90   : > { %2410 = vmatprep.subr.bf16.mxu1 %v2628_v5  ;;  %1688 = vmatprep.mubr.bf16.mxu0 %v2108_v35 }
  0x91   : > { %1728 = vmatprep.mubr.bf16.mxu1 %v2110_v37 }
  0x92   : > { %2389 = vmatpush3.bf16.msra.mxu0 %v2629_v6 }
  0x93   : > { %2411 = vmatpush3.bf16.msra.mxu1 %v2630_v7  ;;  %2390 = vmatprep.subr.bf16.mxu0 %v2631_v8 }
  0x94   : > { %2412 = vmatprep.subr.bf16.mxu1 %v2632_v9 }
  0x96   : > { %2391 = vmatpush3.bf16.msra.mxu0 %v2633_v10 }
  0x97   : > { %2413 = vmatpush3.bf16.msra.mxu1 %v2634_v11  ;;  %2392 = vmatprep.subr.bf16.mxu0 %v2635_v12 }
  0x98   : > { %2414 = vmatprep.subr.bf16.mxu1 %v2636_v13 }
  0x9a   : > { %2393 = vmatpush3.bf16.msra.mxu0 %v2637_v14 }
  0x9b   : > { %2415 = vmatpush3.bf16.msra.mxu1 %v2638_v15  ;;  %2394 = vmatprep.subr.bf16.mxu0 %v2639_v16 }
  0x9c   : > { %2416 = vmatprep.subr.bf16.mxu1 %v2640_v17 }
  0x9e   : > { %2395 = vmatpush3.bf16.msra.mxu0 %v2641_v18 }
  0x9f   : > { %2417 = vmatpush3.bf16.msra.mxu1 %v2642_v19  ;;  %2396 = vmatprep.subr.bf16.mxu0 %v2643_v20 }
  0xa0   : > { %2418 = vmatprep.subr.bf16.mxu1 %v2644_v21 }
  0xa2   : > { %2397 = vmatpush3.bf16.msra.mxu0 %v2645_v22 }
  0xa3   : > { %2419 = vmatpush3.bf16.msra.mxu1 %v2646_v23  ;;  %2398 = vmatprep.subr.bf16.mxu0 %v2647_v24 }
  0xa4   : > { %2420 = vmatprep.subr.bf16.mxu1 %v2648_v25 }
  0xa6   : > { %2399 = vmatpush3.bf16.msra.mxu0 %v2649_v26 }
  0xa7   : > { %2421 = vmatpush3.bf16.msra.mxu1 %v2650_v27  ;;  %2400 = vmatprep.subr.bf16.mxu0 %v2651_v28 }
  0xa8   : > { %2422 = vmatprep.subr.bf16.mxu1 %v2652_v29 }
  0xaa   : > { %2401 = vmatpush3.bf16.msra.mxu0 %v2653_v30 }
  0xab   : > { %2423 = vmatpush3.bf16.msra.mxu1 %v2654_v31 }
  0xad   : > { %1689 = vmatmul.mubr.bf16.vlgmr.msra.gmra.mrb[12].mxu0 %v2107_v34 }
  0xae   : > { %1729 = vmatmul.mubr.bf16.vlgmr.msra.gmra.mrb[12].mxu1 %v2109_v36 }
 0x120   : > { %v2270_v38 = vpop.f32.mrb[0].mxu0 }
 0x121   : > { %v2292_v39 = vpop.f32.mrb[0].mxu1  ;;  %v2271_v41 = vpop.f32.mrb[1].mxu0 }
 0x122   : > { %v2293_v42 = vpop.f32.mrb[1].mxu1  ;;  %v2272_v43 = vadd.f32 %v2271_v41, %v2270_v38  ;;  %v2273_v45 = vpop.f32.mrb[2].mxu0 }
 0x123   : > { %v2294_v44 = vadd.f32 %v2293_v42, %v2292_v39  ;;  %v2295_v46 = vpop.f32.mrb[2].mxu1  ;;  %v2274_v47 = vpop.f32.mrb[3].mxu0 }
 0x124   : > { %v2296_v48 = vpop.f32.mrb[3].mxu1  ;;  %v1451_v49 = vadd.f32 %v2272_v43, %v2094_v40 }
 0x126   : > { %v1491_v50 = vadd.f32 %v2294_v44, %v1451_v49 }
 0x140   : > { %v2314_v51 = vpop.f32.mrb[4].mxu0 }
 0x141   : > { %v2336_v52 = vpop.f32.mrb[4].mxu1  ;;  %v2315_v53 = vpop.f32.mrb[5].mxu0 }
 0x142   : > { %v2337_v54 = vpop.f32.mrb[5].mxu1  ;;  %v2316_v55 = vadd.f32 %v2315_v53, %v2314_v51  ;;  %v2317_v57 = vpop.f32.mrb[6].mxu0 }
 0x143   : > { %v2338_v56 = vadd.f32 %v2337_v54, %v2336_v52  ;;  %v2339_v58 = vpop.f32.mrb[6].mxu1  ;;  %v2318_v59 = vpop.f32.mrb[7].mxu0 }
 0x144   : > { %v2340_v60 = vpop.f32.mrb[7].mxu1  ;;  %v1531_v61 = vadd.f32 %v2316_v55, %v1491_v50 }
 0x146   : > { %v1571_v62 = vadd.f32 %v2338_v56, %v1531_v61 }
 0x160   : > { %v2358_v63 = vpop.f32.mrb[8].mxu0 }
 0x161   : > { %v2380_v0 = vpop.f32.mrb[8].mxu1  ;;  %v2359_v1 = vpop.f32.mrb[9].mxu0 }
 0x162   : > { %v2360_v2 = vadd.f32 %v2359_v1, %v2358_v63  ;;  %v2381_v3 = vpop.f32.mrb[9].mxu1  ;;  %v2361_v4 = vpop.f32.mrb[10].mxu0 }
 0x163   : > { %v2382_v5 = vadd.f32 %v2381_v3, %v2380_v0  ;;  %v2383_v6 = vpop.f32.mrb[10].mxu1  ;;  %v2362_v7 = vpop.f32.mrb[11].mxu0 }
 0x164   : > { %v1611_v8 = vadd.f32 %v2360_v2, %v1571_v62  ;;  %v2384_v9 = vpop.f32.mrb[11].mxu1 }
 0x166   : > { %v1651_v10 = vadd.f32 %v2382_v5, %v1611_v8 }
 0x180   : > { %v2402_v11 = vpop.f32.mrb[12].mxu0 }
 0x181   : > { %v2424_v12 = vpop.f32.mrb[12].mxu1  ;;  %v2403_v13 = vpop.f32.mrb[13].mxu0 }
 0x182   : > { %v2404_v14 = vadd.f32 %v2403_v13, %v2402_v11  ;;  %v2425_v15 = vpop.f32.mrb[13].mxu1  ;;  %v2405_v16 = vpop.f32.mrb[14].mxu0 }
 0x183   : > { %v2426_v17 = vadd.f32 %v2425_v15, %v2424_v12  ;;  %v2427_v18 = vpop.f32.mrb[14].mxu1  ;;  %v2406_v19 = vpop.f32.mrb[15].mxu0 }
 0x184   : > { %v1691_v20 = vadd.f32 %v2404_v14, %v1651_v10  ;;  %v2428_v21 = vpop.f32.mrb[15].mxu1 }
 0x186   : > { %v1731_v22 = vadd.f32 %v2426_v17, %v1691_v20 }
 0x188   : > { %v1736_v23 = vmax.f32 %v1731_v22, 0.0 }
 0x18a   : > { %1738 = vst.msk [vmem:[#allocation2] sm:$0xff] %vm1737_vm0, %v1736_v23  ;;  %1739 = vst.msk [vmem:[#allocation4] sm:$0xff] %vm1737_vm0, %v1736_v23 }
 0x18b PF: > { %v2659_v24 = vld [vmem:[%s2878_s29 + $0x4] ss:$16 sps:$4 sm:$0xff]   ;;  %v2661_v25 = vld [vmem:[%s2878_s29 + $0xc] ss:$16 sps:$4 sm:$0xff]   ;;  %v2771_v26 = vmov 0.0   ;;  %vm1809_vm1 = vcmask 1041408  }
 0x18c   : > { %1886 = vmatprep.mubr.f32.mxu0 %v2771_v26  ;;  %1957 = vmatprep.mubr.f32.mxu1 %v2771_v26  ;;  %v2663_v27 = vld [vmem:[%s2878_s29] ss:$16 sps:$4 sm:$0xff]   ;;  %v2664_v28 = vld [vmem:[%s2878_s29 + $0x8] ss:$16 sps:$4 sm:$0xff]   ;;  %v2665_v29 = vld [vmem:[%s2878_s29 + $0x24] ss:$16 sps:$4 sm:$0xff]  }
 0x18d   : > { %2431 = vmatprep.subr.bf16.mxu0 %v2659_v24  ;;  %2443 = vmatprep.subr.bf16.mxu1 %v2661_v25  ;;  %v2667_v30 = vld [vmem:[%s2878_s29 + $0x2c] ss:$16 sps:$4 sm:$0xff]   ;;  %v2669_v31 = vld [vmem:[%s2878_s29 + $0x20] ss:$16 sps:$4 sm:$0xff]   ;;  %v2670_v32 = vld [vmem:[%s2878_s29 + $0x28] ss:$16 sps:$4 sm:$0xff]  }
 0x18e   : > { %2433 = vmatpush1.bf16.msra.mxu0 %v2663_v27  ;;  %2445 = vmatpush1.bf16.msra.mxu1 %v2664_v28  ;;  %v2671_v33 = vld [vmem:[%s2878_s29 + $0x44] ss:$16 sps:$4 sm:$0xff]   ;;  %v2673_v34 = vld [vmem:[%s2878_s29 + $0x4c] ss:$16 sps:$4 sm:$0xff]   ;;  %v2675_v35 = vld [vmem:[%s2878_s29 + $0x40] ss:$16 sps:$4 sm:$0xff]  }
 0x18f   : > { %2435 = vmatprep.subr.bf16.mxu0 %v2665_v29  ;;  %2447 = vmatprep.subr.bf16.mxu1 %v2667_v30  ;;  %v2676_v36 = vld [vmem:[%s2878_s29 + $0x48] ss:$16 sps:$4 sm:$0xff]   ;;  %v1753_v37 = vld [vmem:[%s2878_s29 + $0x60] sm:$0x11]  ;;  %vm1805_vm2 = vcmask 408576   ;;  %s2772_s14 = smov [#allocation4]  }
 0x190   : > { %v1754_v38 = vld [vmem:[%s2878_s29 + $0x68] sm:$0x11]  ;;  %v1780_v39 = vunpack.c.h.bf16 %v1753_v37  ;;  %v1779_v41 = vunpack.c.l.bf16 %v1753_v37  ;;  %s1984_s29 = sshll.u32 %s2772_s14, 4  ;;  %s1985_s29 = int_to_ptr.vmem [resolvable:$true] %s1984_s29 }
 0x191   : > { %v1782_v40 = vunpack.c.h.bf16 %v1754_v38  ;;  %v1781_v42 = vunpack.c.l.bf16 %v1754_v38  ;;  %v1740_v43 = vld [vmem:[#allocation2] sm:$0xff]  ;;  %s2677_s15 = scalar_lea.vmem %s1985_s29, 128  ;;  %p2684_p5 = scmp.lt.s32.totalorder %s1985_s29, %s1985_s29 }
 0x192   : > { %2437 = vmatpush1.bf16.msra.mxu0 %v2669_v31  ;;  %2449 = vmatpush1.bf16.msra.mxu1 %v2670_v32  ;;  %p2678_p1 = scmp.ne.s32.totalorder %s1985_s29, %s2677_s15  ;;  %p2685_p7 = scmp.lt.s32.totalorder %s2677_s15, %s2677_s15 }
 0x193   : > { %2439 = vmatprep.subr.bf16.mxu0 %v2671_v33  ;;  %2451 = vmatprep.subr.bf16.mxu1 %v2673_v34 }
 0x194   : > { %p2679_p2 = pnand %p2678_p1, %p175_p3  ;;  %p2686_p9 = por %p2685_p7, %p2684_p5 }
 0x196   : > { %2441 = vmatpush1.bf16.msra.mxu0 %v2675_v35  ;;  %2453 = vmatpush1.bf16.msra.mxu1 %v2676_v36  ;;  %p2680_p4 = pneg %p2679_p2 }
 0x197   : > { %2239 = vmatprep.subr.msk.mxu0 %vm1809_vm1, %v1780_v39  ;;  %2242 = vmatprep.subr.msk.mxu1 %vm1809_vm1, %v1782_v40 }
 0x198   : > { %p2687_p10 = pnand %p2686_p9, %p2680_p4 }
 0x19a   : > { %2240 = vmatpush1.msk.msra.mxu0 %vm1809_vm1, %v1779_v41  ;;  %2243 = vmatpush1.msk.msra.mxu1 %vm1809_vm1, %v1781_v42 }
 0x19b   : > { %2241 = vmatmul.mubr.msk.f32.vlgmr.msra.gmra.mrb[0].mxu0 %vm1805_vm2, %v1740_v43  ;;  %2244 = vmatmul.mubr.msk.f32.vlgmr.msra.gmra.mrb[0].mxu1 %vm1805_vm2, %v1740_v43 }
 0x19c   : > { %2690 = shalt.err (!%p2687_p10)
}
 0x19d   : > { %s2691_s20 = scalar_lea.hbm %s3392_s5, 128 }
 0x19e   : > { %p2692_p11 = scmp.ne.s32.totalorder %s3392_s5, %s2691_s20  ;;  %p2697_p0 = scmp.lt.u32.totalorder %s2691_s20, %s3392_s5 }
 0x1a0   : > { %p2693_p12 = pnand %p2692_p11, %p175_p3 }
 0x1a2   : > { %p2694_p13 = pneg %p2693_p12 }
 0x1a4   : > { %p2699_p1 = pnand %p2697_p0, %p2694_p13 }
 0x1a6   : > { %2702 = shalt.err (!%p2699_p1)
}
 0x1a7   : > { %2469 = dma.vmem_to_hbm [thread:$0]  (%p175_p3), %s1985_s29, 128, %s3392_s5, [#allocation5]   ;;  %v1785_v44 = vlaneseq  ;;  %v1783_v48 = vld [vmem:[%s313_s28] sm:$0xf] }
 0x1a8   : > { %s2253_s29 = sshll.u32 %s2830_s25, 9  ;;  %s1998_s17 = sshll.u32 %s2880_s9, 4  ;;  %s3338_s17 = int_to_ptr.vmem [resolvable:$true] %s1998_s17 }
 0x1a9   : > { %v1786_v45 = vshrl.u32 %v1785_v44, 7  ;;  %s3336_s20 = scalar_lea.hbm %s3393_s6, %s2253_s29  ;;  %s1973_s26 = scalar_lea.sflag [#allocation7], %s2867_s16 }
 0x1aa   : > { %s2703_s10 = scalar_lea.vmem %s3338_s17, 512  ;;  %s2773_s11 = smov [#allocation6]  }
 0x1ab   : > { %v1787_v46 = vsub.s32 0, %v1786_v45  ;;  %v1795_v47 = vsub.s32 2, %v1786_v45  ;;  %v1791_v49 = vsub.s32 1, %v1786_v45  ;;  %v1799_v50 = vsub.s32 3, %v1786_v45  ;;  %p2704_p2 = scmp.ne.s32.totalorder %s3338_s17, %s2703_s10  ;;  %s2707_s12 = sshll.u32 %s2773_s11, 4  ;;  %s2708_s12 = int_to_ptr.vmem [resolvable:$false] %s2707_s12 }
 0x1ac   : > { %s2709_s13 = scalar_lea.vmem %s2708_s12, 1024  ;;  %p2710_p7 = scmp.lt.s32.totalorder %s3338_s17, %s2708_s12 }
 0x1ad   : > { %v1788_v51 = vrot.slane %v1783_v48, %v1787_v46  ;;  %v1796_v52 = vrot.slane %v1783_v48, %v1795_v47  ;;  %v1792_v53 = vrot.slane %v1783_v48, %v1791_v49  ;;  %v1800_v54 = vrot.slane %v1783_v48, %v1799_v50  ;;  %p2705_p4 = pnand %p2704_p2, %p2850_p6  ;;  %p2711_p9 = scmp.lt.s32.totalorder %s2709_s13, %s2703_s10 }
 0x1af   : > { %p2706_p5 = pneg %p2705_p4  ;;  %p2712_p10 = por %p2711_p9, %p2710_p7 }
 0x1b1   : > { %p2713_p11 = pnand %p2712_p10, %p2706_p5 }
 0x26e   : > { %v1888_v55 = vpop.f32.mrb[0].mxu0  ;;  %v1959_v56 = vpop.f32.mrb[0].mxu1 }
 0x26f   : > { %v1889_v57 = vadd.f32 %v1888_v55, %v1788_v51  ;;  %v1960_v58 = vadd.f32 %v1959_v56, %v1796_v52  ;;  %v1890_v59 = vpop.f32.mrb[1].mxu0  ;;  %v1961_v60 = vpop.f32.mrb[1].mxu1 }
 0x270   : > { %v1891_v61 = vadd.f32 %v1890_v59, %v1792_v53  ;;  %v1962_v62 = vadd.f32 %v1961_v60, %v1800_v54 }
 0x271   : > { %v1964_v63 = vmax.f32 %v1889_v57, 0.0  ;;  %v1966_v0 = vmax.f32 %v1960_v58, 0.0 }
 0x272   : > { %v1965_v1 = vmax.f32 %v1891_v61, 0.0  ;;  %v1967_v2 = vmax.f32 %v1962_v62, 0.0 }
 0x273   : > { %1968 = vst [vmem:[%s2880_s9] sm:$0xff] %v1964_v63  ;;  %1970 = vst [vmem:[%s2880_s9 + $0x10] sm:$0xff] %v1966_v0 }
 0x274   : > { %1969 = vst [vmem:[%s2880_s9 + $0x8] sm:$0xff] %v1965_v1  ;;  %1971 = vst [vmem:[%s2880_s9 + $0x18] sm:$0xff] %v1967_v2 }
 0x275   : > { %2716 = shalt.err (!%p2713_p11)
}
 0x276   : > { %s2717_s16 = scalar_lea.hbm %s3336_s20, 512  ;;  %s2721_s15 = scalar_lea.hbm %s3393_s6, 2048 }
 0x277   : > { %p2718_p12 = scmp.ne.s32.totalorder %s3336_s20, %s2717_s16  ;;  %p2722_p1 = scmp.lt.u32.totalorder %s3336_s20, %s3393_s6 }
 0x278   : > { %p2723_p2 = scmp.lt.u32.totalorder %s2721_s15, %s2717_s16  ;;  %p2725_p5 = scmp.lt.u32.totalorder %s2717_s16, %s3336_s20 }
 0x279   : > { %p2719_p13 = pnand %p2718_p12, %p2850_p6 }
 0x27a   : > { %p2724_p4 = por %p2723_p2, %p2722_p1 }
 0x27b   : > { %p2720_p0 = pneg %p2719_p13 }
 0x27c   : > { %p2726_p7 = por %p2725_p5, %p2724_p4 }
 0x27e   : > { %p2727_p9 = pnand %p2726_p7, %p2720_p0 }
 0x280   : > { %2730 = shalt.err (!%p2727_p9)
}
 0x281   : > { %2470 = dma.vmem_to_hbm [thread:$0]  (%p2850_p6), %s3338_s17, 512, %s3336_s20, %s1973_s26  }
 0x282   : > { %2748 = dma.done.wait (%p175_p3), [#allocation5], 128  }
 0x283   : > { %2750 = vsyncadd (%p175_p3), [#allocation5], 4294967168 }
 0x284 PF: > { %p2480_p10 = scmp.ge.s32.totalorder %s2769_s24, 2  ;;  %s2014_s28 = sand.u32 1, %s2757_s21  }
 0x285   : > { %s2015_s19 = scalar_lea.sflag [#allocation7], %s2014_s28 }
 0x286   : > { %p2475_p11 = pnand %p2480_p10, %p2854_p8 }
 0x288   : > { %2752 = dma.done.wait (!%p2475_p11), %s2015_s19, 512  }
 0x289   : > { %2754 = vsyncadd (!%p2475_p11), %s2015_s19, 4294966784  ;;  %p18_p6 = scmp.ge.s32.totalorder %s2834_s27, 6   ;;  %s3396_s21 = smov %s2761_s22 }
 0x28a   : > { %s3397_s22 = smov %s2765_s23  ;;  %s3398_s23 = smov %s2846_s30 }
 0x28b   : > { %s3399_s24 = smov %s2834_s27  ;;  %20 = sbr.rel (!%p18_p6) target bundleno = 4 (0x4), region = 119 }
 0x292   :  { %2020 = vsyncpa [#allocation5], 1 }
 0x293   :  { %2022 = vsyncpa [#allocation5 + $0x1], 1 }
 0x294   :  { %2023 = vsyncpa [#allocation7], 1 }
 0x295   :  { %2025 = vsyncpa [#allocation7 + $0x1], 1 }

</bundles_post_ra>
